<compile_context>
chip_gen: v6e
topology: v6e:2x2x1
jax: 0.10.0
libtpu: 0.0.40
codegen_flags: <defaults>
</compile_context>

<pallas_src>
import functools

import jax
import jax.numpy as jnp
from jax.experimental import pallas as pl
from jax.experimental.pallas import tpu as pltpu


# -----------------------------------------------------------------------------
# Pallas kernels
# -----------------------------------------------------------------------------
def _conv_affine_relu_kernel(a_ref, w_ref, scale_ref, shift_ref, o_ref):
    """o = relu((a @ w) * scale + shift)  -- conv-as-matmul + folded BN + ReLU."""
    z = jnp.dot(a_ref[...], w_ref[...], preferred_element_type=jnp.float32)
    z = jnp.maximum(z * scale_ref[...] + shift_ref[...], 0.0)
    o_ref[...] = z.astype(o_ref.dtype)


def conv_affine_relu(a, w, scale, shift, *, out_dtype, block_rows=None):
    """Fused matmul + per-channel affine + ReLU, 1-2 large row tiles."""
    M, K = a.shape
    N = w.shape[1]
    if block_rows is None:
        # One block per TensorCore on megacore parts; minimal pipeline steps.
        block_rows = M // 2 if (M % 16 == 0 and M >= 1024) else M
    assert M % block_rows == 0, (M, block_rows)
    return pl.pallas_call(
        _conv_affine_relu_kernel,
        out_shape=jax.ShapeDtypeStruct((M, N), out_dtype),
        grid=(M // block_rows,),
        in_specs=[
            pl.BlockSpec((block_rows, K), lambda i: (i, 0)),   # im2col patches
            pl.BlockSpec((K, N), lambda i: (0, 0)),            # folded weights
            pl.BlockSpec((1, N), lambda i: (0, 0)),            # BN scale
            pl.BlockSpec((1, N), lambda i: (0, 0)),            # BN shift
        ],
        out_specs=pl.BlockSpec((block_rows, N), lambda i: (i, 0)),
        compiler_params=pltpu.CompilerParams(
            dimension_semantics=("parallel",)),
    )(a, w, scale, shift)


def _conv_bn_relu_maxpool_kernel(a_ref, w_ref, scale_ref, shift_ref, o_ref,
                                 *, win):
    """conv (matmul) + BN + ReLU, then MaxPool3d(2) over `win` aligned row
    blocks (im2col rows are pre-ordered window-element-major)."""
    z = jnp.dot(a_ref[...], w_ref[...], preferred_element_type=jnp.float32)
    z = jnp.maximum(z * scale_ref[...] + shift_ref[...], 0.0)
    q = o_ref.shape[0]                       # pooled positions in this block
    m = z[0:q, :]
    for e in range(1, win):                  # 7 aligned VPU maximums
        m = jnp.maximum(m, z[e * q:(e + 1) * q, :])
    o_ref[...] = m.astype(o_ref.dtype)


def conv_bn_relu_maxpool(a, w, scale, shift, *, batch, q, out_dtype):
    M, K = a.shape
    N = w.shape[1]
    win = 8                                  # 2x2x2 pooling window
    assert M == batch * win * q, (M, batch, q)
    assert q % 8 == 0, q
    kern = functools.partial(_conv_bn_relu_maxpool_kernel, win=win)
    return pl.pallas_call(
        kern,
        out_shape=jax.ShapeDtypeStruct((batch * q, N), out_dtype),
        grid=(batch,),
        in_specs=[
            pl.BlockSpec((win * q, K), lambda i: (i, 0)),
            pl.BlockSpec((K, N), lambda i: (0, 0)),
            pl.BlockSpec((1, N), lambda i: (0, 0)),
            pl.BlockSpec((1, N), lambda i: (0, 0)),
        ],
        out_specs=pl.BlockSpec((q, N), lambda i: (i, 0)),
        compiler_params=pltpu.CompilerParams(
            dimension_semantics=("parallel",)),
    )(a, w, scale, shift)


def _conv_relu_pool_head_kernel(a_ref, w_ref, b_ref, p_ref,
                                fw1_ref, fb1_ref, fw2t_ref, fb2_ref, o_ref):
    """conv3 + ReLU + global average pool (pooling-matrix matmul) + FC head."""
    z = jnp.dot(a_ref[...], w_ref[...], preferred_element_type=jnp.float32)
    z = jnp.maximum(z + b_ref[...], 0.0)                         # (M3, 128)
    feat = jnp.dot(p_ref[...], z, preferred_element_type=jnp.float32)  # (8, 128)
    h = jnp.dot(feat, fw1_ref[...], preferred_element_type=jnp.float32)
    h = jnp.maximum(h + fb1_ref[...], 0.0)                       # (8, 64)
    o = jnp.sum(h * fw2t_ref[...], axis=-1, keepdims=True) + fb2_ref[...]
    o_ref[...] = o                                               # (8, 1)


def conv_relu_pool_head(a, w, b, pool_mat, fw1, fb1, fw2t, fb2):
    rows = pool_mat.shape[0]
    return pl.pallas_call(
        _conv_relu_pool_head_kernel,
        out_shape=jax.ShapeDtypeStruct((rows, 1), jnp.float32),
    )(a, w, b, pool_mat, fw1, fb1, fw2t, fb2)


# -----------------------------------------------------------------------------
# JAX glue: im2col patch extraction (data movement only)
# -----------------------------------------------------------------------------
def _pad_cols(a, k_to):
    k = a.shape[-1]
    return jnp.pad(a, ((0, 0), (0, k_to - k))) if k_to > k else a


def im2col_3d(x, k=3, pad_k_to=None, out_dtype=None):
    """x: (B, D, H, W, C) channels-last -> (B*D*H*W, k^3*C [padded]); padding=1.

    Row order (b, d, h, w); K order tap-major / channel-minor.
    """
    B, D, H, W, C = x.shape
    xp = jnp.pad(x, ((0, 0), (1, 1), (1, 1), (1, 1), (0, 0)))
    taps = [xp[:, kd:kd + D, kh:kh + H, kw:kw + W, :]
            for kd in range(k) for kh in range(k) for kw in range(k)]
    p = jnp.concatenate(taps, axis=-1).reshape(B * D * H * W, k ** 3 * C)
    if out_dtype is not None:
        p = p.astype(out_dtype)
    if pad_k_to is not None:
        p = _pad_cols(p, pad_k_to)
    return p


def im2col_3d_pool_order(x, k=3, pad_k_to=None, out_dtype=None):
    """im2col whose rows are ordered (b, 2x2x2-window-element, do, ho, wo) so
    the fused MaxPool3d(2) reduces over 8 contiguous, sublane-aligned row
    blocks inside the conv2 kernel."""
    B, D, H, W, C = x.shape
    K = k ** 3 * C
    Do, Ho, Wo = D // 2, H // 2, W // 2
    xp = jnp.pad(x, ((0, 0), (1, 1), (1, 1), (1, 1), (0, 0)))
    taps = [xp[:, kd:kd + D, kh:kh + H, kw:kw + W, :]
            for kd in range(k) for kh in range(k) for kw in range(k)]
    p = jnp.concatenate(taps, axis=-1)                        # (B, D, H, W, K)
    p = p.reshape(B, Do, 2, Ho, 2, Wo, 2, K)
    p = p.transpose(0, 2, 4, 6, 1, 3, 5, 7)                   # (B,2,2,2,Do,Ho,Wo,K)
    p = p.reshape(B * 8 * Do * Ho * Wo, K)
    if out_dtype is not None:
        p = p.astype(out_dtype)
    if pad_k_to is not None:
        p = _pad_cols(p, pad_k_to)
    return p


# -----------------------------------------------------------------------------
# Parameters (deterministic synthetic weights, BN folded for inference)
# -----------------------------------------------------------------------------
K1P, K2P, K3P = 32, 896, 1792      # padded K: 27 -> 32, 864 -> 896, 1728 -> 1792
NP = 128                           # padded output-channel width (lane-dense)


def init_params(key):
    ks = jax.random.split(key, 18)
    n = lambda k, shape, s=0.05: s * jax.random.normal(k, shape, jnp.float32)
    eps = 1e-5

    def bn_fold(conv_bias, gamma, beta, rmean, rvar):
        scale = gamma / jnp.sqrt(rvar + eps)
        shift = (conv_bias - rmean) * scale + beta
        return scale, shift

    def pad_w(w, k_to, n_to):
        return jnp.pad(w, ((0, k_to - w.shape[0]), (0, n_to - w.shape[1])))

    def pad_vec(v, n_to, fill):
        return jnp.pad(v, (0, n_to - v.shape[0]),
                       constant_values=fill).reshape(1, n_to)

    p = {}
    # conv1: Conv3d(1, 32, 3, pad=1) + BN(32); folded weight (27, 32) -> (32, 128)
    w1 = n(ks[0], (27 * 1, 32))
    cb1 = n(ks[1], (32,), 0.01)
    g1 = 1.0 + 0.1 * jax.random.normal(ks[2], (32,), jnp.float32)
    be1 = n(ks[3], (32,), 0.01)
    rm1 = n(ks[4], (32,), 0.01)
    rv1 = 1.0 + 0.1 * jnp.abs(jax.random.normal(ks[5], (32,), jnp.float32))
    s1, t1 = bn_fold(cb1, g1, be1, rm1, rv1)
    p["w1"] = pad_w(w1, K1P, NP)
    p["s1"] = pad_vec(s1, NP, 1.0)
    p["t1"] = pad_vec(t1, NP, 0.0)

    # conv2: Conv3d(32, 64, 3, pad=1) + BN(64); folded (864, 64) -> (896, 128) bf16
    w2 = n(ks[6], (27 * 32, 64), 0.02)
    cb2 = n(ks[7], (64,), 0.01)
    g2 = 1.0 + 0.1 * jax.random.normal(ks[8], (64,), jnp.float32)
    be2 = n(ks[9], (64,), 0.01)
    rm2 = n(ks[10], (64,), 0.01)
    rv2 = 1.0 + 0.1 * jnp.abs(jax.random.normal(ks[11], (64,), jnp.float32))
    s2, t2 = bn_fold(cb2, g2, be2, rm2, rv2)
    p["w2"] = pad_w(w2, K2P, NP).astype(jnp.bfloat16)
    p["s2"] = pad_vec(s2, NP, 1.0)
    p["t2"] = pad_vec(t2, NP, 0.0)

    # conv3: Conv3d(64, 128, 3, pad=1), no BN; folded (1728, 128) -> (1792, 128) bf16
    w3 = n(ks[12], (27 * 64, 128), 0.02)
    cb3 = n(ks[13], (128,), 0.01)
    p["w3"] = pad_w(w3, K3P, NP).astype(jnp.bfloat16)
    p["b3"] = cb3.reshape(1, 128)

    # fc head: Linear(128, 64) -> ReLU -> Linear(64, 1)
    p["fw1"] = n(ks[14], (128, 64), 0.05)
    p["fb1"] = n(ks[15], (1, 64), 0.01)
    p["fw2t"] = n(ks[16], (64,), 0.05).reshape(1, 64)   # Linear(64,1) weight^T
    p["fb2"] = n(ks[17], (1, 1), 0.01)
    return p


# -----------------------------------------------------------------------------
# Full forward pass
# -----------------------------------------------------------------------------
def cube_regressor_forward(x_ncdhw, params):
    # NCDHW -> NDHWC (channels-last)
    x = jnp.transpose(x_ncdhw, (0, 2, 3, 4, 1)).astype(jnp.float32)
    B, D, H, W, _ = x.shape
    Do, Ho, Wo = D // 2, H // 2, W // 2
    Q = Do * Ho * Wo

    # Conv3d(1->32) + BN + ReLU   (K padded to 32, N padded to 128, bf16 out)
    a1 = im2col_3d(x, pad_k_to=K1P)                              # (B*D*H*W, 32)
    y1 = conv_affine_relu(a1, params["w1"], params["s1"], params["t1"],
                          out_dtype=jnp.bfloat16)                # (M1, 128)
    x1 = y1[:, :32].reshape(B, D, H, W, 32)

    # Conv3d(32->64) + BN + ReLU + MaxPool3d(2)  fused in one kernel
    a2 = im2col_3d_pool_order(x1, pad_k_to=K2P,
                              out_dtype=jnp.bfloat16)            # (B*8*Q, 896)
    y2 = conv_bn_relu_maxpool(a2, params["w2"], params["s2"], params["t2"],
                              batch=B, q=Q, out_dtype=jnp.bfloat16)  # (B*Q, 128)
    x2 = y2[:, :64].reshape(B, Do, Ho, Wo, 64)

    # Conv3d(64->128) + ReLU + AdaptiveAvgPool3d(1) + FC head  fused in one kernel
    a3 = im2col_3d(x2, pad_k_to=K3P, out_dtype=jnp.bfloat16)     # (B*Q, 1792)
    rows = jnp.arange(8, dtype=jnp.int32)[:, None]
    cols = jnp.arange(B * Q, dtype=jnp.int32)[None, :]
    pool_mat = jnp.where(cols // Q == rows, 1.0 / Q, 0.0).astype(jnp.float32)
    out = conv_relu_pool_head(a3, params["w3"], params["b3"], pool_mat,
                              params["fw1"], params["fb1"],
                              params["fw2t"], params["fb2"])     # (8, 1)
    return out[:B, 0]                                            # (B,)


# -----------------------------------------------------------------------------
if __name__ == "__main__":
    key = jax.random.PRNGKey(0)
    k_in, k_par = jax.random.split(key)

    # (batch=2, in_channels=1, cube 8x8x8) in PyTorch NCDHW layout
    x = jax.random.normal(k_in, (2, 1, 8, 8, 8), jnp.float32)
    params = init_params(k_par)

    out = cube_regressor_forward(x, params)
    out = jax.block_until_ready(out)

    assert out.shape == (2,), out.shape
    assert out.dtype == jnp.float32
    assert bool(jnp.all(jnp.isfinite(out)))
    print("KERNEL_OK")
</pallas_src>

<mosaic_0001>
module attributes {stable_mosaic.version = 11 : i64} {
  func.func @_conv_affine_relu_kernel(%arg0: i32, %arg1: memref<512x32xf32, #tpu.memory_space<vmem>>, %arg2: memref<32x128xf32, #tpu.memory_space<vmem>>, %arg3: memref<1x128xf32, #tpu.memory_space<vmem>>, %arg4: memref<1x128xf32, #tpu.memory_space<vmem>>, %arg5: memref<512x128xbf16, #tpu.memory_space<vmem>>) attributes {dimension_semantics = [#tpu.dimension_semantics<parallel>], iteration_bounds = array<i64: 2>, scalar_prefetch = 0 : i64, scratch_operands = 0 : i64, tpu.core_type = #tpu.core_type<tc>, window_params = [{transform_indices = @transform_0, window_bounds = array<i64: 512, 32>}, {pipeline_mode = #tpu.pipeline_mode<synchronous>, transform_indices = @transform_1, window_bounds = array<i64: 32, 128>}, {pipeline_mode = #tpu.pipeline_mode<synchronous>, transform_indices = @transform_2, window_bounds = array<i64: 1, 128>}, {pipeline_mode = #tpu.pipeline_mode<synchronous>, transform_indices = @transform_3, window_bounds = array<i64: 1, 128>}, {transform_indices = @transform_4, window_bounds = array<i64: 512, 128>}]} {
    %c0 = arith.constant 0 : index
    %c0_0 = arith.constant 0 : index
    %0 = vector.load %arg1[%c0, %c0_0] : memref<512x32xf32, #tpu.memory_space<vmem>>, vector<512x32xf32>
    %c0_1 = arith.constant 0 : index
    %c0_2 = arith.constant 0 : index
    %1 = vector.load %arg2[%c0_1, %c0_2] : memref<32x128xf32, #tpu.memory_space<vmem>>, vector<32x128xf32>
    %cst = arith.constant dense<0.000000e+00> : vector<512x128xf32>
    %2 = tpu.matmul %0, %1, %cst {dimension_numbers = #tpu.dot_dimension_numbers<[1], [0], [0], [1], [0, 0, 1, 1], [], []>} : vector<512x32xf32>, vector<32x128xf32>, vector<512x128xf32> -> vector<512x128xf32>
    %c0_3 = arith.constant 0 : index
    %c0_4 = arith.constant 0 : index
    %3 = vector.load %arg3[%c0_3, %c0_4] : memref<1x128xf32, #tpu.memory_space<vmem>>, vector<1x128xf32>
    %4 = vector.broadcast %3 : vector<1x128xf32> to vector<512x128xf32>
    %5 = arith.mulf %2, %4 : vector<512x128xf32>
    %c0_5 = arith.constant 0 : index
    %c0_6 = arith.constant 0 : index
    %6 = vector.load %arg4[%c0_5, %c0_6] : memref<1x128xf32, #tpu.memory_space<vmem>>, vector<1x128xf32>
    %7 = vector.broadcast %6 : vector<1x128xf32> to vector<512x128xf32>
    %8 = arith.addf %5, %7 : vector<512x128xf32>
    %cst_7 = arith.constant 0.000000e+00 : f32
    %9 = vector.broadcast %cst_7 : f32 to vector<512x128xf32>
    %10 = arith.maximumf %8, %9 : vector<512x128xf32>
    %11 = arith.truncf %10 : vector<512x128xf32> to vector<512x128xbf16>
    %c0_8 = arith.constant 0 : index
    %c0_9 = arith.constant 0 : index
    %12 = vector.load %arg5[%c0_8, %c0_9] : memref<512x128xbf16, #tpu.memory_space<vmem>>, vector<512x128xbf16>
    tpu.vector_store %arg5[%c0_8, %c0_9], %11 {strides = array<i32>} : memref<512x128xbf16, #tpu.memory_space<vmem>>, vector<512x128xbf16>,
    return
  }
  func.func @transform_0(%arg0: i32) -> (i32, i32) {
    %c0_i32 = arith.constant 0 : i32
    %c0_i32_0 = arith.constant 0 : i32
    return %arg0, %c0_i32 : i32, i32
  }
  func.func @transform_1(%arg0: i32) -> (i32, i32) {
    %c0_i32 = arith.constant 0 : i32
    %c0_i32_0 = arith.constant 0 : i32
    %c0_i32_1 = arith.constant 0 : i32
    return %c0_i32, %c0_i32_0 : i32, i32
  }
  func.func @transform_2(%arg0: i32) -> (i32, i32) {
    %c0_i32 = arith.constant 0 : i32
    %c0_i32_0 = arith.constant 0 : i32
    %c0_i32_1 = arith.constant 0 : i32
    return %c0_i32, %c0_i32_0 : i32, i32
  }
  func.func @transform_3(%arg0: i32) -> (i32, i32) {
    %c0_i32 = arith.constant 0 : i32
    %c0_i32_0 = arith.constant 0 : i32
    %c0_i32_1 = arith.constant 0 : i32
    return %c0_i32, %c0_i32_0 : i32, i32
  }
  func.func @transform_4(%arg0: i32) -> (i32, i32) {
    %c0_i32 = arith.constant 0 : i32
    %c0_i32_0 = arith.constant 0 : i32
    return %arg0, %c0_i32 : i32, i32
  }
}

</mosaic_0001>

<bundles_post_ra>
// kernel: tpu_custom_call.1
= control target key start
LH: loop header
LB: loop body
LE: loop exit
PB: predicated region body
PF: predicated region fallthrough
CT: control target
= control target key end

     0   :  { %9 = vsyncpa [#allocation3], 0  ;;  %s2576_s0 = inlined_call_operand.vmem [shape: f32[1024,32], index: 0, kind: input, shape index: {}]   ;;  %s2577_s1 = inlined_call_operand.vmem [shape: f32[32,128], index: 1, kind: input, shape index: {}]   ;;  %s2578_s2 = inlined_call_operand.vmem [shape: f32[1,128], index: 2, kind: input, shape index: {}]   ;;  %s2579_s3 = inlined_call_operand.vmem [shape: f32[1,128], index: 3, kind: input, shape index: {}]   ;;  %s2580_s4 = inlined_call_operand.hbm [shape: bf16[1024,128], index: 4, kind: output, shape index: {}]  }
   0x1   :  { %11 = vsyncpa [#allocation3 + $0x1], 0  ;;  %s2156_s15 = smov 0   ;;  %s2158_s16 = smov 0  }
   0x2   :  { %s2160_s17 = smov 0   ;;  %s2162_s18 = smov 0  }
   0x3 LB: > { %s2177_s19 = sadd.s32 4294967295, %s2126_s18   ;;  %s1447_s20 = sadd.s32 4294967294, %s2126_s18   ;;  %s2126_s18 = sphi %s2162_s18, %s2586_s18   ;;  %s2122_s17 = sphi %s2160_s17, %s2585_s17   ;;  %s2118_s16 = sphi %s2158_s16, %s2584_s16   ;;  %s2114_s15 = sphi %s2156_s15, %s2583_s15  }
   0x4   : > { %s2181_s21 = sadd.s32 1, %s2126_s18   ;;  %s113_s22 = sadd.s32 1, %s2122_s17 }
   0x5   : > { %s110_s23 = ssub.s32 %s2126_s18, %s2181_s21  ;;  %p123_p0 = scmp.ne.s32.totalorder %s2122_s17, %s2118_s16 }
   0x6   : > { %p111_p1 = scmp.eq.s32.totalorder %s110_s23, 0  ;;  %p124_p2 = scmp.eq.s32.totalorder %s2177_s19, 1 }
   0x7   : > { %p129_p3 = scmp.ne.s32.totalorder %s2118_s16, %s2114_s15  ;;  %p130_p4 = scmp.eq.s32.totalorder %s1447_s20, 1 }
   0x8   : > { %s2192_s24 = scalar_select %p111_p1, %s2122_s17, %s113_s22  }
   0x9   : > { %p2194_p5 = por %p124_p2, %p123_p0  ;;  %p2198_p6 = por %p130_p4, %p129_p3 }
   0xa   : > { %p1450_p7 = scmp.ge.s32.totalorder %s2126_s18, 1  ;;  %p166_p8 = scmp.lt.s32.totalorder %s2126_s18, 3 }
   0xc   : > { %p167_p9 = pnand %p1450_p7, %p166_p8 }
   0xd   : > { %s1452_s5 = sshll.u32 (!%p167_p9), %s2177_s19, 6  ;;  %s189_s27 = sand.u32 (!%p167_p9), 1, %s2118_s16  }
   0xe   : > { %170 = sbr.rel (%p167_p9) target bundleno = 306 (0x132), region = 36  ;;  %p193_p10 = scmp.lt.s32.totalorder (!%p167_p9), %s1452_s5, 127 }
   0xf   : > { %s1451_s28 = sshll.u32 (!%p167_p9), %s189_s27, 8  ;;  %s1653_s30 = sshll.u32 (!%p167_p9), %s2177_s19, 12 }
  0x10   : > { %s2381_s29 = scalar_lea.vmem (!%p167_p9), [#allocation2], %s1451_s28  ;;  %s2528_s8 = scalar_lea.hbm (!%p167_p9), %s2580_s4, %s1653_s30 }
  0x11   : > { %s2536_s19 = scalar_lea.sflag (!%p167_p9), [#allocation3], %s189_s27 }
  0x13   : > { %v266_v0 = vld [vmem:[%s2577_s1 + $0x18] sm:$0xff]  ;;  %v265_v1 = vld [vmem:[%s2577_s1 + $0x10] sm:$0xff]  ;;  %v264_v2 = vld [vmem:[%s2577_s1 + $0x8] sm:$0xff]  ;;  %s2588_s5 = smov (!%p193_p10, %s1452_s5), 127  ;;  %vm267_vm0 = vcmask 261120  }
  0x14   : > { %1913 = vmatprep.subr.mxu0 %v266_v0  ;;  %2017 = vmatprep.subr.mxu1 %v266_v0  ;;  %v263_v3 = vld [vmem:[%s2577_s1] sm:$0xff]  ;;  %s1453_s10 = sshll.u32 %s2588_s5, 3  ;;  %s1385_s5 = sshll.u32 %s2381_s29, 4  ;;  %s2530_s5 = int_to_ptr.vmem [resolvable:$true] %s1385_s5 }
  0x15   : > { %1914 = vmatpush3.msra.mxu0 %v266_v0  ;;  %2021 = vmatpush3.msra.mxu1 %v266_v0  ;;  %s2220_s13 = scalar_lea.vmem %s2576_s0, %s1453_s10  ;;  %s2066_s9 = scalar_lea.vmem %s2530_s5, 4096 }
  0x16   : > { %1915 = vmatprep.subr.mxu0 %v265_v1  ;;  %2018 = vmatprep.subr.mxu1 %v265_v1  ;;  %v199_v4 = vld [vmem:[%s2220_s13] sm:$0xff]  ;;  %v200_v6 = vld [vmem:[%s2220_s13 + $0x8] sm:$0xff]  ;;  %v201_v8 = vld [vmem:[%s2220_s13 + $0x10] sm:$0xff]  ;;  %p2067_p11 = scmp.ne.s32.totalorder %s2530_s5, %s2066_s9  ;;  %s2128_s10 = smov [#allocation2]  }
  0x17   : > { %1916 = vmatpush3.msra.mxu0 %v265_v1  ;;  %2022 = vmatpush3.msra.mxu1 %v265_v1  ;;  %v231_v5 = vld [vmem:[%s2220_s13 + $0x100] sm:$0xff]  ;;  %v232_v7 = vld [vmem:[%s2220_s13 + $0x108] sm:$0xff]  ;;  %v233_v9 = vld [vmem:[%s2220_s13 + $0x110] sm:$0xff]  ;;  %s2070_s11 = sshll.u32 %s2128_s10, 4  ;;  %s2071_s11 = int_to_ptr.vmem [resolvable:$false] %s2070_s11 }
  0x18   : > { %1917 = vmatprep.subr.mxu0 %v264_v2  ;;  %2019 = vmatprep.subr.mxu1 %v264_v2  ;;  %v202_v10 = vld [vmem:[%s2220_s13 + $0x18] sm:$0xff]  ;;  %v203_v12 = vld [vmem:[%s2220_s13 + $0x20] sm:$0xff]  ;;  %v204_v14 = vld [vmem:[%s2220_s13 + $0x28] sm:$0xff]  ;;  %p2068_p12 = pnand %p2067_p11, %p2194_p5  ;;  %s2072_s12 = scalar_lea.vmem %s2071_s11, 8192 }
  0x19   : > { %1918 = vmatpush3.msra.mxu0 %v264_v2  ;;  %2023 = vmatpush3.msra.mxu1 %v264_v2  ;;  %v234_v11 = vld [vmem:[%s2220_s13 + $0x118] sm:$0xff]  ;;  %v235_v13 = vld [vmem:[%s2220_s13 + $0x120] sm:$0xff]  ;;  %v236_v15 = vld [vmem:[%s2220_s13 + $0x128] sm:$0xff]  ;;  %p2073_p0 = scmp.lt.s32.totalorder %s2530_s5, %s2071_s11  ;;  %p2074_p1 = scmp.lt.s32.totalorder %s2072_s12, %s2066_s9 }
  0x1a   : > { %1919 = vmatprep.subr.mxu0 %v263_v3  ;;  %2020 = vmatprep.subr.mxu1 %v263_v3  ;;  %v205_v16 = vld [vmem:[%s2220_s13 + $0x30] sm:$0xff]  ;;  %v206_v18 = vld [vmem:[%s2220_s13 + $0x38] sm:$0xff]  ;;  %v207_v20 = vld [vmem:[%s2220_s13 + $0x40] sm:$0xff]  ;;  %p2069_p13 = pneg %p2068_p12 }
  0x1b   : > { %1920 = vmatpush3.msra.mxu0 %v263_v3  ;;  %2024 = vmatpush3.msra.mxu1 %v263_v3  ;;  %v237_v17 = vld [vmem:[%s2220_s13 + $0x130] sm:$0xff]  ;;  %v238_v19 = vld [vmem:[%s2220_s13 + $0x138] sm:$0xff]  ;;  %v239_v21 = vld [vmem:[%s2220_s13 + $0x140] sm:$0xff]  ;;  %p2075_p2 = por %p2074_p1, %p2073_p0 }
  0x1c   : > { %1921 = vmatprep.mubr.msk.f32.mxu0 %vm267_vm0, %v199_v4  ;;  %1969 = vmatprep.mubr.msk.f32.mxu1 %vm267_vm0, %v231_v5  ;;  %v208_v22 = vld [vmem:[%s2220_s13 + $0x48] sm:$0xff]  ;;  %v209_v24 = vld [vmem:[%s2220_s13 + $0x50] sm:$0xff]  ;;  %v210_v26 = vld [vmem:[%s2220_s13 + $0x58] sm:$0xff] }
  0x1d   : > { %1922 = vmatmul.mubr.msk.f32.vlgmr.msra.gmra.mxu0 %vm267_vm0, %v200_v6  ;;  %1970 = vmatmul.mubr.msk.f32.vlgmr.msra.gmra.mxu1 %vm267_vm0, %v232_v7  ;;  %v240_v23 = vld [vmem:[%s2220_s13 + $0x148] sm:$0xff]  ;;  %v241_v25 = vld [vmem:[%s2220_s13 + $0x150] sm:$0xff]  ;;  %v242_v27 = vld [vmem:[%s2220_s13 + $0x158] sm:$0xff]  ;;  %p2076_p3 = pnand %p2075_p2, %p2069_p13 }
  0x1e   : > { %1924 = vmatprep.mubr.msk.f32.mxu0 %vm267_vm0, %v201_v8  ;;  %1972 = vmatprep.mubr.msk.f32.mxu1 %vm267_vm0, %v233_v9  ;;  %v211_v28 = vld [vmem:[%s2220_s13 + $0x60] sm:$0xff]  ;;  %v212_v30 = vld [vmem:[%s2220_s13 + $0x68] sm:$0xff]  ;;  %v213_v32 = vld [vmem:[%s2220_s13 + $0x70] sm:$0xff] }
  0x1f   : > { %v243_v29 = vld [vmem:[%s2220_s13 + $0x160] sm:$0xff]  ;;  %v244_v31 = vld [vmem:[%s2220_s13 + $0x168] sm:$0xff]  ;;  %v245_v33 = vld [vmem:[%s2220_s13 + $0x170] sm:$0xff] }
  0x20   : > { %v214_v34 = vld [vmem:[%s2220_s13 + $0x78] sm:$0xff]  ;;  %v215_v36 = vld [vmem:[%s2220_s13 + $0x80] sm:$0xff]  ;;  %v216_v38 = vld [vmem:[%s2220_s13 + $0x88] sm:$0xff] }
  0x21   : > { %1925 = vmatmul.mubr.msk.f32.gmra.mxu0 %vm267_vm0, %v202_v10  ;;  %1973 = vmatmul.mubr.msk.f32.gmra.mxu1 %vm267_vm0, %v234_v11  ;;  %v246_v35 = vld [vmem:[%s2220_s13 + $0x178] sm:$0xff]  ;;  %v247_v37 = vld [vmem:[%s2220_s13 + $0x180] sm:$0xff]  ;;  %v248_v39 = vld [vmem:[%s2220_s13 + $0x188] sm:$0xff] }
  0x22   : > { %1927 = vmatprep.mubr.msk.f32.mxu0 %vm267_vm0, %v203_v12  ;;  %1975 = vmatprep.mubr.msk.f32.mxu1 %vm267_vm0, %v235_v13  ;;  %v217_v40 = vld [vmem:[%s2220_s13 + $0x90] sm:$0xff]  ;;  %v218_v42 = vld [vmem:[%s2220_s13 + $0x98] sm:$0xff]  ;;  %v219_v44 = vld [vmem:[%s2220_s13 + $0xa0] sm:$0xff] }
  0x23   : > { %v249_v41 = vld [vmem:[%s2220_s13 + $0x190] sm:$0xff]  ;;  %v250_v43 = vld [vmem:[%s2220_s13 + $0x198] sm:$0xff]  ;;  %v251_v45 = vld [vmem:[%s2220_s13 + $0x1a0] sm:$0xff] }
  0x24   : > { %v220_v46 = vld [vmem:[%s2220_s13 + $0xa8] sm:$0xff]  ;;  %v221_v48 = vld [vmem:[%s2220_s13 + $0xb0] sm:$0xff]  ;;  %v222_v50 = vld [vmem:[%s2220_s13 + $0xb8] sm:$0xff] }
  0x25   : > { %1928 = vmatmul.mubr.msk.f32.gmra.mxu0 %vm267_vm0, %v204_v14  ;;  %1976 = vmatmul.mubr.msk.f32.gmra.mxu1 %vm267_vm0, %v236_v15  ;;  %v252_v47 = vld [vmem:[%s2220_s13 + $0x1a8] sm:$0xff]  ;;  %v253_v49 = vld [vmem:[%s2220_s13 + $0x1b0] sm:$0xff]  ;;  %v254_v51 = vld [vmem:[%s2220_s13 + $0x1b8] sm:$0xff] }
  0x26   : > { %1930 = vmatprep.mubr.msk.f32.mxu0 %vm267_vm0, %v205_v16  ;;  %1978 = vmatprep.mubr.msk.f32.mxu1 %vm267_vm0, %v237_v17  ;;  %v223_v52 = vld [vmem:[%s2220_s13 + $0xc0] sm:$0xff]  ;;  %v224_v54 = vld [vmem:[%s2220_s13 + $0xc8] sm:$0xff]  ;;  %v225_v56 = vld [vmem:[%s2220_s13 + $0xd0] sm:$0xff] }
  0x27   : > { %v255_v53 = vld [vmem:[%s2220_s13 + $0x1c0] sm:$0xff]  ;;  %v256_v55 = vld [vmem:[%s2220_s13 + $0x1c8] sm:$0xff]  ;;  %v257_v57 = vld [vmem:[%s2220_s13 + $0x1d0] sm:$0xff] }
  0x28   : > { %v226_v58 = vld [vmem:[%s2220_s13 + $0xd8] sm:$0xff]  ;;  %v227_v60 = vld [vmem:[%s2220_s13 + $0xe0] sm:$0xff]  ;;  %v228_v62 = vld [vmem:[%s2220_s13 + $0xe8] sm:$0xff] }
  0x29   : > { %1931 = vmatmul.mubr.msk.f32.gmra.mxu0 %vm267_vm0, %v206_v18  ;;  %1979 = vmatmul.mubr.msk.f32.gmra.mxu1 %vm267_vm0, %v238_v19  ;;  %v258_v59 = vld [vmem:[%s2220_s13 + $0x1d8] sm:$0xff]  ;;  %v259_v61 = vld [vmem:[%s2220_s13 + $0x1e0] sm:$0xff]  ;;  %v260_v63 = vld [vmem:[%s2220_s13 + $0x1e8] sm:$0xff] }
  0x2a   : > { %1933 = vmatprep.mubr.msk.f32.mxu0 %vm267_vm0, %v207_v20  ;;  %1981 = vmatprep.mubr.msk.f32.mxu1 %vm267_vm0, %v239_v21  ;;  %v229_v0 = vld [vmem:[%s2220_s13 + $0xf0] sm:$0xff]  ;;  %v230_v2 = vld [vmem:[%s2220_s13 + $0xf8] sm:$0xff]  ;;  %v2353_v4 = vld [vmem:[%s2578_s2] ss:$0 sm:$0xff] }
  0x2b   : > { %v261_v1 = vld [vmem:[%s2220_s13 + $0x1f0] sm:$0xff]  ;;  %v262_v3 = vld [vmem:[%s2220_s13 + $0x1f8] sm:$0xff]  ;;  %v2358_v6 = vld [vmem:[%s2579_s3] ss:$0 sm:$0xff] }
  0x2d   : > { %1934 = vmatmul.mubr.msk.f32.gmra.mxu0 %vm267_vm0, %v208_v22  ;;  %1982 = vmatmul.mubr.msk.f32.gmra.mxu1 %vm267_vm0, %v240_v23 }
  0x2e   : > { %1936 = vmatprep.mubr.msk.f32.mxu0 %vm267_vm0, %v209_v24  ;;  %1984 = vmatprep.mubr.msk.f32.mxu1 %vm267_vm0, %v241_v25 }
  0x31   : > { %1937 = vmatmul.mubr.msk.f32.gmra.mxu0 %vm267_vm0, %v210_v26  ;;  %1985 = vmatmul.mubr.msk.f32.gmra.mxu1 %vm267_vm0, %v242_v27 }
  0x32   : > { %1939 = vmatprep.mubr.msk.f32.mxu0 %vm267_vm0, %v211_v28  ;;  %1987 = vmatprep.mubr.msk.f32.mxu1 %vm267_vm0, %v243_v29 }
  0x35   : > { %1940 = vmatmul.mubr.msk.f32.gmra.mxu0 %vm267_vm0, %v212_v30  ;;  %1988 = vmatmul.mubr.msk.f32.gmra.mxu1 %vm267_vm0, %v244_v31 }
  0x36   : > { %1942 = vmatprep.mubr.msk.f32.mxu0 %vm267_vm0, %v213_v32  ;;  %1990 = vmatprep.mubr.msk.f32.mxu1 %vm267_vm0, %v245_v33 }
  0x39   : > { %1943 = vmatmul.mubr.msk.f32.gmra.mxu0 %vm267_vm0, %v214_v34  ;;  %1991 = vmatmul.mubr.msk.f32.gmra.mxu1 %vm267_vm0, %v246_v35 }
  0x3a   : > { %1945 = vmatprep.mubr.msk.f32.mxu0 %vm267_vm0, %v215_v36  ;;  %1993 = vmatprep.mubr.msk.f32.mxu1 %vm267_vm0, %v247_v37 }
  0x3d   : > { %1946 = vmatmul.mubr.msk.f32.gmra.mxu0 %vm267_vm0, %v216_v38  ;;  %1994 = vmatmul.mubr.msk.f32.gmra.mxu1 %vm267_vm0, %v248_v39 }
  0x3e   : > { %1948 = vmatprep.mubr.msk.f32.mxu0 %vm267_vm0, %v217_v40  ;;  %1996 = vmatprep.mubr.msk.f32.mxu1 %vm267_vm0, %v249_v41 }
  0x41   : > { %1949 = vmatmul.mubr.msk.f32.gmra.mxu0 %vm267_vm0, %v218_v42  ;;  %1997 = vmatmul.mubr.msk.f32.gmra.mxu1 %vm267_vm0, %v250_v43 }
  0x42   : > { %1951 = vmatprep.mubr.msk.f32.mxu0 %vm267_vm0, %v219_v44  ;;  %1999 = vmatprep.mubr.msk.f32.mxu1 %vm267_vm0, %v251_v45 }
  0x45   : > { %1952 = vmatmul.mubr.msk.f32.gmra.mxu0 %vm267_vm0, %v220_v46  ;;  %2000 = vmatmul.mubr.msk.f32.gmra.mxu1 %vm267_vm0, %v252_v47 }
  0x46   : > { %1954 = vmatprep.mubr.msk.f32.mxu0 %vm267_vm0, %v221_v48  ;;  %2002 = vmatprep.mubr.msk.f32.mxu1 %vm267_vm0, %v253_v49 }
  0x49   : > { %1955 = vmatmul.mubr.msk.f32.gmra.mxu0 %vm267_vm0, %v222_v50  ;;  %2003 = vmatmul.mubr.msk.f32.gmra.mxu1 %vm267_vm0, %v254_v51 }
  0x4a   : > { %1957 = vmatprep.mubr.msk.f32.mxu0 %vm267_vm0, %v223_v52  ;;  %2005 = vmatprep.mubr.msk.f32.mxu1 %vm267_vm0, %v255_v53 }
  0x4d   : > { %1958 = vmatmul.mubr.msk.f32.gmra.mxu0 %vm267_vm0, %v224_v54  ;;  %2006 = vmatmul.mubr.msk.f32.gmra.mxu1 %vm267_vm0, %v256_v55 }
  0x4e   : > { %1960 = vmatprep.mubr.msk.f32.mxu0 %vm267_vm0, %v225_v56  ;;  %2008 = vmatprep.mubr.msk.f32.mxu1 %vm267_vm0, %v257_v57 }
  0x51   : > { %1961 = vmatmul.mubr.msk.f32.gmra.mxu0 %vm267_vm0, %v226_v58  ;;  %2009 = vmatmul.mubr.msk.f32.gmra.mxu1 %vm267_vm0, %v258_v59 }
  0x52   : > { %1963 = vmatprep.mubr.msk.f32.mxu0 %vm267_vm0, %v227_v60  ;;  %2011 = vmatprep.mubr.msk.f32.mxu1 %vm267_vm0, %v259_v61 }
  0x55   : > { %1964 = vmatmul.mubr.msk.f32.gmra.mxu0 %vm267_vm0, %v228_v62  ;;  %2012 = vmatmul.mubr.msk.f32.gmra.mxu1 %vm267_vm0, %v260_v63 }
  0x56   : > { %1966 = vmatprep.mubr.msk.f32.mxu0 %vm267_vm0, %v229_v0  ;;  %2014 = vmatprep.mubr.msk.f32.mxu1 %vm267_vm0, %v261_v1 }
  0x59   : > { %1967 = vmatmul.mubr.msk.f32.gmra.mxu0 %vm267_vm0, %v230_v2  ;;  %2015 = vmatmul.mubr.msk.f32.gmra.mxu1 %vm267_vm0, %v262_v3 }
  0xdd   : > { %v1923_v5 = vpop.f32.mrf.mxu0  ;;  %v1971_v7 = vpop.f32.mrf.mxu1 }
  0xde   : > { %v853_v8 = vmul.f32 %v1923_v5, %v2353_v4  ;;  %v885_v9 = vmul.f32 %v1971_v7, %v2353_v4 }
  0xdf   : > { %v526_v10 = vpop.f32.mrf.mxu0  ;;  %v686_v11 = vpop.f32.mrf.mxu1 }
  0xe0   : > { %v924_v12 = vadd.f32 %v2358_v6, %v853_v8  ;;  %v956_v13 = vadd.f32 %v2358_v6, %v885_v9  ;;  %v852_v14 = vmul.f32 %v2353_v4, %v526_v10  ;;  %v884_v15 = vmul.f32 %v2353_v4, %v686_v11 }
  0xe1   : > { %v1926_v16 = vpop.f32.mrf.mxu0  ;;  %v1974_v17 = vpop.f32.mrf.mxu1 }
  0xe2   : > { %v923_v18 = vadd.f32 %v2358_v6, %v852_v14  ;;  %v955_v19 = vadd.f32 %v2358_v6, %v884_v15  ;;  %v988_v20 = vmax.f32 %v924_v12, 0.0  ;;  %v1020_v21 = vmax.f32 %v956_v13, 0.0 }
  0xe3   : > { %v855_v22 = vmul.f32 %v1926_v16, %v2353_v4  ;;  %v887_v23 = vmul.f32 %v1974_v17, %v2353_v4  ;;  %v536_v24 = vpop.f32.mrf.mxu0  ;;  %v696_v25 = vpop.f32.mrf.mxu1 }
  0xe4   : > { %v987_v26 = vmax.f32 %v923_v18, 0.0  ;;  %v1019_v27 = vmax.f32 %v955_v19, 0.0  ;;  %v854_v28 = vmul.f32 %v2353_v4, %v536_v24  ;;  %v886_v29 = vmul.f32 %v2353_v4, %v696_v25 }
  0xe5   : > { %v926_v30 = vadd.f32 %v2358_v6, %v855_v22  ;;  %v958_v31 = vadd.f32 %v2358_v6, %v887_v23  ;;  %v1929_v32 = vpop.f32.mrf.mxu0  ;;  %v1977_v33 = vpop.f32.mrf.mxu1 }
  0xe6   : > { %v1657_v34 = vpack.c.bf16 %v988_v20, %v987_v26  ;;  %v1737_v35 = vpack.c.bf16 %v1020_v21, %v1019_v27  ;;  %v925_v36 = vadd.f32 %v2358_v6, %v854_v28  ;;  %v957_v37 = vadd.f32 %v2358_v6, %v886_v29 }
  0xe7   : > { %v990_v38 = vmax.f32 %v926_v30, 0.0  ;;  %v1022_v39 = vmax.f32 %v958_v31, 0.0  ;;  %v857_v40 = vmul.f32 %v1929_v32, %v2353_v4  ;;  %v889_v41 = vmul.f32 %v1977_v33, %v2353_v4  ;;  %v546_v42 = vpop.f32.mrf.mxu0  ;;  %v706_v43 = vpop.f32.mrf.mxu1 }
  0xe8   : > { %1658 = vst [vmem:[%s2381_s29] sm:$0xff] %v1657_v34   ;;  %1829 = vst [vmem:[%s2381_s29 + $0x80] sm:$0xff] %v1737_v35   ;;  %v989_v44 = vmax.f32 %v925_v36, 0.0  ;;  %v1021_v45 = vmax.f32 %v957_v37, 0.0  ;;  %v856_v46 = vmul.f32 %v2353_v4, %v546_v42  ;;  %v888_v47 = vmul.f32 %v2353_v4, %v706_v43 }
  0xe9   : > { %v928_v48 = vadd.f32 %v2358_v6, %v857_v40  ;;  %v960_v49 = vadd.f32 %v2358_v6, %v889_v41  ;;  %v1932_v50 = vpop.f32.mrf.mxu0  ;;  %v1980_v51 = vpop.f32.mrf.mxu1 }
  0xea   : > { %v1662_v52 = vpack.c.bf16 %v990_v38, %v989_v44  ;;  %v1742_v53 = vpack.c.bf16 %v1022_v39, %v1021_v45  ;;  %v927_v54 = vadd.f32 %v2358_v6, %v856_v46  ;;  %v959_v55 = vadd.f32 %v2358_v6, %v888_v47 }
  0xeb   : > { %v992_v56 = vmax.f32 %v928_v48, 0.0  ;;  %v1024_v57 = vmax.f32 %v960_v49, 0.0  ;;  %v859_v58 = vmul.f32 %v1932_v50, %v2353_v4  ;;  %v891_v59 = vmul.f32 %v1980_v51, %v2353_v4  ;;  %v556_v60 = vpop.f32.mrf.mxu0  ;;  %v716_v61 = vpop.f32.mrf.mxu1 }
  0xec   : > { %1814 = vst [vmem:[%s2381_s29 + $0x8] sm:$0xff] %v1662_v52   ;;  %1830 = vst [vmem:[%s2381_s29 + $0x88] sm:$0xff] %v1742_v53   ;;  %v991_v62 = vmax.f32 %v927_v54, 0.0  ;;  %v1023_v63 = vmax.f32 %v959_v55, 0.0  ;;  %v858_v0 = vmul.f32 %v2353_v4, %v556_v60  ;;  %v890_v1 = vmul.f32 %v2353_v4, %v716_v61 }
  0xed   : > { %v930_v2 = vadd.f32 %v2358_v6, %v859_v58  ;;  %v962_v3 = vadd.f32 %v2358_v6, %v891_v59  ;;  %v1935_v5 = vpop.f32.mrf.mxu0  ;;  %v1983_v7 = vpop.f32.mrf.mxu1 }
  0xee   : > { %v1667_v8 = vpack.c.bf16 %v992_v56, %v991_v62  ;;  %v1747_v9 = vpack.c.bf16 %v1024_v57, %v1023_v63  ;;  %v929_v10 = vadd.f32 %v2358_v6, %v858_v0  ;;  %v961_v11 = vadd.f32 %v2358_v6, %v890_v1 }
  0xef   : > { %v994_v12 = vmax.f32 %v930_v2, 0.0  ;;  %v1026_v13 = vmax.f32 %v962_v3, 0.0  ;;  %v861_v14 = vmul.f32 %v1935_v5, %v2353_v4  ;;  %v893_v15 = vmul.f32 %v1983_v7, %v2353_v4  ;;  %v566_v16 = vpop.f32.mrf.mxu0  ;;  %v726_v17 = vpop.f32.mrf.mxu1 }
  0xf0   : > { %1815 = vst [vmem:[%s2381_s29 + $0x10] sm:$0xff] %v1667_v8   ;;  %1831 = vst [vmem:[%s2381_s29 + $0x90] sm:$0xff] %v1747_v9   ;;  %v993_v18 = vmax.f32 %v929_v10, 0.0  ;;  %v1025_v19 = vmax.f32 %v961_v11, 0.0  ;;  %v860_v20 = vmul.f32 %v2353_v4, %v566_v16  ;;  %v892_v21 = vmul.f32 %v2353_v4, %v726_v17 }
  0xf1   : > { %v932_v22 = vadd.f32 %v2358_v6, %v861_v14  ;;  %v964_v23 = vadd.f32 %v2358_v6, %v893_v15  ;;  %v1938_v24 = vpop.f32.mrf.mxu0  ;;  %v1986_v25 = vpop.f32.mrf.mxu1 }
  0xf2   : > { %v1672_v26 = vpack.c.bf16 %v994_v12, %v993_v18  ;;  %v1752_v27 = vpack.c.bf16 %v1026_v13, %v1025_v19  ;;  %v931_v28 = vadd.f32 %v2358_v6, %v860_v20  ;;  %v963_v29 = vadd.f32 %v2358_v6, %v892_v21 }
  0xf3   : > { %v996_v30 = vmax.f32 %v932_v22, 0.0  ;;  %v1028_v31 = vmax.f32 %v964_v23, 0.0  ;;  %v863_v32 = vmul.f32 %v1938_v24, %v2353_v4  ;;  %v895_v33 = vmul.f32 %v1986_v25, %v2353_v4  ;;  %v576_v34 = vpop.f32.mrf.mxu0  ;;  %v736_v35 = vpop.f32.mrf.mxu1 }
  0xf4   : > { %1816 = vst [vmem:[%s2381_s29 + $0x18] sm:$0xff] %v1672_v26   ;;  %1832 = vst [vmem:[%s2381_s29 + $0x98] sm:$0xff] %v1752_v27   ;;  %v995_v36 = vmax.f32 %v931_v28, 0.0  ;;  %v1027_v37 = vmax.f32 %v963_v29, 0.0  ;;  %v862_v38 = vmul.f32 %v2353_v4, %v576_v34  ;;  %v894_v39 = vmul.f32 %v2353_v4, %v736_v35 }
  0xf5   : > { %v934_v40 = vadd.f32 %v2358_v6, %v863_v32  ;;  %v966_v41 = vadd.f32 %v2358_v6, %v895_v33  ;;  %v1941_v42 = vpop.f32.mrf.mxu0  ;;  %v1989_v43 = vpop.f32.mrf.mxu1 }
  0xf6   : > { %v1677_v44 = vpack.c.bf16 %v996_v30, %v995_v36  ;;  %v1757_v45 = vpack.c.bf16 %v1028_v31, %v1027_v37  ;;  %v933_v46 = vadd.f32 %v2358_v6, %v862_v38  ;;  %v965_v47 = vadd.f32 %v2358_v6, %v894_v39 }
  0xf7   : > { %v998_v48 = vmax.f32 %v934_v40, 0.0  ;;  %v1030_v49 = vmax.f32 %v966_v41, 0.0  ;;  %v865_v50 = vmul.f32 %v1941_v42, %v2353_v4  ;;  %v897_v51 = vmul.f32 %v1989_v43, %v2353_v4  ;;  %v586_v52 = vpop.f32.mrf.mxu0  ;;  %v746_v53 = vpop.f32.mrf.mxu1 }
  0xf8   : > { %1817 = vst [vmem:[%s2381_s29 + $0x20] sm:$0xff] %v1677_v44   ;;  %1833 = vst [vmem:[%s2381_s29 + $0xa0] sm:$0xff] %v1757_v45   ;;  %v997_v54 = vmax.f32 %v933_v46, 0.0  ;;  %v1029_v55 = vmax.f32 %v965_v47, 0.0  ;;  %v864_v56 = vmul.f32 %v2353_v4, %v586_v52  ;;  %v896_v57 = vmul.f32 %v2353_v4, %v746_v53 }
  0xf9   : > { %v936_v58 = vadd.f32 %v2358_v6, %v865_v50  ;;  %v968_v59 = vadd.f32 %v2358_v6, %v897_v51  ;;  %v1944_v60 = vpop.f32.mrf.mxu0  ;;  %v1992_v61 = vpop.f32.mrf.mxu1 }
  0xfa   : > { %v1682_v62 = vpack.c.bf16 %v998_v48, %v997_v54  ;;  %v1762_v63 = vpack.c.bf16 %v1030_v49, %v1029_v55  ;;  %v935_v0 = vadd.f32 %v2358_v6, %v864_v56  ;;  %v967_v1 = vadd.f32 %v2358_v6, %v896_v57 }
  0xfb   : > { %v1000_v2 = vmax.f32 %v936_v58, 0.0  ;;  %v1032_v3 = vmax.f32 %v968_v59, 0.0  ;;  %v867_v5 = vmul.f32 %v1944_v60, %v2353_v4  ;;  %v899_v7 = vmul.f32 %v1992_v61, %v2353_v4  ;;  %v596_v8 = vpop.f32.mrf.mxu0  ;;  %v756_v9 = vpop.f32.mrf.mxu1 }
  0xfc   : > { %1818 = vst [vmem:[%s2381_s29 + $0x28] sm:$0xff] %v1682_v62   ;;  %1834 = vst [vmem:[%s2381_s29 + $0xa8] sm:$0xff] %v1762_v63   ;;  %v999_v10 = vmax.f32 %v935_v0, 0.0  ;;  %v1031_v11 = vmax.f32 %v967_v1, 0.0  ;;  %v866_v12 = vmul.f32 %v2353_v4, %v596_v8  ;;  %v898_v13 = vmul.f32 %v2353_v4, %v756_v9 }
  0xfd   : > { %v938_v14 = vadd.f32 %v2358_v6, %v867_v5  ;;  %v970_v15 = vadd.f32 %v2358_v6, %v899_v7  ;;  %v1947_v16 = vpop.f32.mrf.mxu0  ;;  %v1995_v17 = vpop.f32.mrf.mxu1 }
  0xfe   : > { %v1687_v18 = vpack.c.bf16 %v1000_v2, %v999_v10  ;;  %v1767_v19 = vpack.c.bf16 %v1032_v3, %v1031_v11  ;;  %v937_v20 = vadd.f32 %v2358_v6, %v866_v12  ;;  %v969_v21 = vadd.f32 %v2358_v6, %v898_v13 }
  0xff   : > { %v1002_v22 = vmax.f32 %v938_v14, 0.0  ;;  %v1034_v23 = vmax.f32 %v970_v15, 0.0  ;;  %v869_v24 = vmul.f32 %v1947_v16, %v2353_v4  ;;  %v901_v25 = vmul.f32 %v1995_v17, %v2353_v4  ;;  %v606_v26 = vpop.f32.mrf.mxu0  ;;  %v766_v27 = vpop.f32.mrf.mxu1 }
 0x100   : > { %1819 = vst [vmem:[%s2381_s29 + $0x30] sm:$0xff] %v1687_v18   ;;  %1835 = vst [vmem:[%s2381_s29 + $0xb0] sm:$0xff] %v1767_v19   ;;  %v1001_v28 = vmax.f32 %v937_v20, 0.0  ;;  %v1033_v29 = vmax.f32 %v969_v21, 0.0  ;;  %v868_v30 = vmul.f32 %v2353_v4, %v606_v26  ;;  %v900_v31 = vmul.f32 %v2353_v4, %v766_v27 }
 0x101   : > { %v940_v32 = vadd.f32 %v2358_v6, %v869_v24  ;;  %v972_v33 = vadd.f32 %v2358_v6, %v901_v25  ;;  %v1950_v34 = vpop.f32.mrf.mxu0  ;;  %v1998_v35 = vpop.f32.mrf.mxu1 }
 0x102   : > { %v1692_v36 = vpack.c.bf16 %v1002_v22, %v1001_v28  ;;  %v1772_v37 = vpack.c.bf16 %v1034_v23, %v1033_v29  ;;  %v939_v38 = vadd.f32 %v2358_v6, %v868_v30  ;;  %v971_v39 = vadd.f32 %v2358_v6, %v900_v31 }
 0x103   : > { %v1004_v40 = vmax.f32 %v940_v32, 0.0  ;;  %v1036_v41 = vmax.f32 %v972_v33, 0.0  ;;  %v871_v42 = vmul.f32 %v1950_v34, %v2353_v4  ;;  %v903_v43 = vmul.f32 %v1998_v35, %v2353_v4  ;;  %v616_v44 = vpop.f32.mrf.mxu0  ;;  %v776_v45 = vpop.f32.mrf.mxu1 }
 0x104   : > { %1820 = vst [vmem:[%s2381_s29 + $0x38] sm:$0xff] %v1692_v36   ;;  %1836 = vst [vmem:[%s2381_s29 + $0xb8] sm:$0xff] %v1772_v37   ;;  %v1003_v46 = vmax.f32 %v939_v38, 0.0  ;;  %v1035_v47 = vmax.f32 %v971_v39, 0.0  ;;  %v870_v48 = vmul.f32 %v2353_v4, %v616_v44  ;;  %v902_v49 = vmul.f32 %v2353_v4, %v776_v45 }
 0x105   : > { %v942_v50 = vadd.f32 %v2358_v6, %v871_v42  ;;  %v974_v51 = vadd.f32 %v2358_v6, %v903_v43  ;;  %v1953_v52 = vpop.f32.mrf.mxu0  ;;  %v2001_v53 = vpop.f32.mrf.mxu1 }
 0x106   : > { %v1697_v54 = vpack.c.bf16 %v1004_v40, %v1003_v46  ;;  %v1777_v55 = vpack.c.bf16 %v1036_v41, %v1035_v47  ;;  %v941_v56 = vadd.f32 %v2358_v6, %v870_v48  ;;  %v973_v57 = vadd.f32 %v2358_v6, %v902_v49 }
 0x107   : > { %v1006_v58 = vmax.f32 %v942_v50, 0.0  ;;  %v1038_v59 = vmax.f32 %v974_v51, 0.0  ;;  %v873_v60 = vmul.f32 %v1953_v52, %v2353_v4  ;;  %v905_v61 = vmul.f32 %v2001_v53, %v2353_v4  ;;  %v626_v62 = vpop.f32.mrf.mxu0  ;;  %v786_v63 = vpop.f32.mrf.mxu1 }
 0x108   : > { %1821 = vst [vmem:[%s2381_s29 + $0x40] sm:$0xff] %v1697_v54   ;;  %1837 = vst [vmem:[%s2381_s29 + $0xc0] sm:$0xff] %v1777_v55   ;;  %v1005_v0 = vmax.f32 %v941_v56, 0.0  ;;  %v1037_v1 = vmax.f32 %v973_v57, 0.0  ;;  %v872_v2 = vmul.f32 %v2353_v4, %v626_v62  ;;  %v904_v3 = vmul.f32 %v2353_v4, %v786_v63 }
 0x109   : > { %v944_v5 = vadd.f32 %v2358_v6, %v873_v60  ;;  %v976_v7 = vadd.f32 %v2358_v6, %v905_v61  ;;  %v1956_v8 = vpop.f32.mrf.mxu0  ;;  %v2004_v9 = vpop.f32.mrf.mxu1 }
 0x10a   : > { %v1702_v10 = vpack.c.bf16 %v1006_v58, %v1005_v0  ;;  %v1782_v11 = vpack.c.bf16 %v1038_v59, %v1037_v1  ;;  %v943_v12 = vadd.f32 %v2358_v6, %v872_v2  ;;  %v975_v13 = vadd.f32 %v2358_v6, %v904_v3 }
 0x10b   : > { %v1008_v14 = vmax.f32 %v944_v5, 0.0  ;;  %v1040_v15 = vmax.f32 %v976_v7, 0.0  ;;  %v875_v16 = vmul.f32 %v1956_v8, %v2353_v4  ;;  %v907_v17 = vmul.f32 %v2004_v9, %v2353_v4  ;;  %v636_v18 = vpop.f32.mrf.mxu0  ;;  %v796_v19 = vpop.f32.mrf.mxu1 }
 0x10c   : > { %1822 = vst [vmem:[%s2381_s29 + $0x48] sm:$0xff] %v1702_v10   ;;  %1838 = vst [vmem:[%s2381_s29 + $0xc8] sm:$0xff] %v1782_v11   ;;  %v1007_v20 = vmax.f32 %v943_v12, 0.0  ;;  %v1039_v21 = vmax.f32 %v975_v13, 0.0  ;;  %v874_v22 = vmul.f32 %v2353_v4, %v636_v18  ;;  %v906_v23 = vmul.f32 %v2353_v4, %v796_v19 }
 0x10d   : > { %v946_v24 = vadd.f32 %v2358_v6, %v875_v16  ;;  %v978_v25 = vadd.f32 %v2358_v6, %v907_v17  ;;  %v1959_v26 = vpop.f32.mrf.mxu0  ;;  %v2007_v27 = vpop.f32.mrf.mxu1 }
 0x10e   : > { %v1707_v28 = vpack.c.bf16 %v1008_v14, %v1007_v20  ;;  %v1787_v29 = vpack.c.bf16 %v1040_v15, %v1039_v21  ;;  %v945_v30 = vadd.f32 %v2358_v6, %v874_v22  ;;  %v977_v31 = vadd.f32 %v2358_v6, %v906_v23 }
 0x10f   : > { %v1010_v32 = vmax.f32 %v946_v24, 0.0  ;;  %v1042_v33 = vmax.f32 %v978_v25, 0.0  ;;  %v877_v34 = vmul.f32 %v1959_v26, %v2353_v4  ;;  %v909_v35 = vmul.f32 %v2007_v27, %v2353_v4  ;;  %v646_v36 = vpop.f32.mrf.mxu0  ;;  %v806_v37 = vpop.f32.mrf.mxu1 }
 0x110   : > { %1823 = vst [vmem:[%s2381_s29 + $0x50] sm:$0xff] %v1707_v28   ;;  %1839 = vst [vmem:[%s2381_s29 + $0xd0] sm:$0xff] %v1787_v29   ;;  %v1009_v38 = vmax.f32 %v945_v30, 0.0  ;;  %v1041_v39 = vmax.f32 %v977_v31, 0.0  ;;  %v876_v40 = vmul.f32 %v2353_v4, %v646_v36  ;;  %v908_v41 = vmul.f32 %v2353_v4, %v806_v37 }
 0x111   : > { %v948_v42 = vadd.f32 %v2358_v6, %v877_v34  ;;  %v980_v43 = vadd.f32 %v2358_v6, %v909_v35  ;;  %v1962_v44 = vpop.f32.mrf.mxu0  ;;  %v2010_v45 = vpop.f32.mrf.mxu1 }
 0x112   : > { %v1712_v46 = vpack.c.bf16 %v1010_v32, %v1009_v38  ;;  %v1792_v47 = vpack.c.bf16 %v1042_v33, %v1041_v39  ;;  %v947_v48 = vadd.f32 %v2358_v6, %v876_v40  ;;  %v979_v49 = vadd.f32 %v2358_v6, %v908_v41 }
 0x113   : > { %v1012_v50 = vmax.f32 %v948_v42, 0.0  ;;  %v1044_v51 = vmax.f32 %v980_v43, 0.0  ;;  %v879_v52 = vmul.f32 %v1962_v44, %v2353_v4  ;;  %v911_v53 = vmul.f32 %v2010_v45, %v2353_v4  ;;  %v656_v54 = vpop.f32.mrf.mxu0  ;;  %v816_v55 = vpop.f32.mrf.mxu1 }
 0x114   : > { %1824 = vst [vmem:[%s2381_s29 + $0x58] sm:$0xff] %v1712_v46   ;;  %1840 = vst [vmem:[%s2381_s29 + $0xd8] sm:$0xff] %v1792_v47   ;;  %v1011_v56 = vmax.f32 %v947_v48, 0.0  ;;  %v1043_v57 = vmax.f32 %v979_v49, 0.0  ;;  %v878_v58 = vmul.f32 %v2353_v4, %v656_v54  ;;  %v910_v59 = vmul.f32 %v2353_v4, %v816_v55 }
 0x115   : > { %v950_v60 = vadd.f32 %v2358_v6, %v879_v52  ;;  %v982_v61 = vadd.f32 %v2358_v6, %v911_v53  ;;  %v1965_v62 = vpop.f32.mrf.mxu0  ;;  %v2013_v63 = vpop.f32.mrf.mxu1 }
 0x116   : > { %v1717_v0 = vpack.c.bf16 %v1012_v50, %v1011_v56  ;;  %v1797_v1 = vpack.c.bf16 %v1044_v51, %v1043_v57  ;;  %v949_v2 = vadd.f32 %v2358_v6, %v878_v58  ;;  %v981_v3 = vadd.f32 %v2358_v6, %v910_v59 }
 0x117   : > { %v1014_v5 = vmax.f32 %v950_v60, 0.0  ;;  %v1046_v7 = vmax.f32 %v982_v61, 0.0  ;;  %v881_v8 = vmul.f32 %v1965_v62, %v2353_v4  ;;  %v913_v9 = vmul.f32 %v2013_v63, %v2353_v4  ;;  %v666_v10 = vpop.f32.mrf.mxu0  ;;  %v826_v11 = vpop.f32.mrf.mxu1 }
 0x118   : > { %1825 = vst [vmem:[%s2381_s29 + $0x60] sm:$0xff] %v1717_v0   ;;  %1841 = vst [vmem:[%s2381_s29 + $0xe0] sm:$0xff] %v1797_v1   ;;  %v1013_v12 = vmax.f32 %v949_v2, 0.0  ;;  %v1045_v13 = vmax.f32 %v981_v3, 0.0  ;;  %v880_v14 = vmul.f32 %v2353_v4, %v666_v10  ;;  %v912_v15 = vmul.f32 %v2353_v4, %v826_v11 }
 0x119   : > { %v952_v16 = vadd.f32 %v2358_v6, %v881_v8  ;;  %v984_v17 = vadd.f32 %v2358_v6, %v913_v9  ;;  %v1968_v18 = vpop.f32.mrf.mxu0  ;;  %v2016_v19 = vpop.f32.mrf.mxu1 }
 0x11a   : > { %v1722_v20 = vpack.c.bf16 %v1014_v5, %v1013_v12  ;;  %v1802_v21 = vpack.c.bf16 %v1046_v7, %v1045_v13  ;;  %v951_v22 = vadd.f32 %v2358_v6, %v880_v14  ;;  %v983_v23 = vadd.f32 %v2358_v6, %v912_v15 }
 0x11b   : > { %v1016_v24 = vmax.f32 %v952_v16, 0.0  ;;  %v1048_v25 = vmax.f32 %v984_v17, 0.0  ;;  %v883_v26 = vmul.f32 %v1968_v18, %v2353_v4  ;;  %v915_v27 = vmul.f32 %v2016_v19, %v2353_v4  ;;  %v676_v28 = vpop.f32.mrf.mxu0  ;;  %v836_v29 = vpop.f32.mrf.mxu1 }
 0x11c   : > { %1826 = vst [vmem:[%s2381_s29 + $0x68] sm:$0xff] %v1722_v20   ;;  %1842 = vst [vmem:[%s2381_s29 + $0xe8] sm:$0xff] %v1802_v21   ;;  %v1015_v30 = vmax.f32 %v951_v22, 0.0  ;;  %v1047_v31 = vmax.f32 %v983_v23, 0.0  ;;  %v882_v32 = vmul.f32 %v2353_v4, %v676_v28  ;;  %v914_v33 = vmul.f32 %v2353_v4, %v836_v29 }
 0x11d   : > { %v954_v34 = vadd.f32 %v2358_v6, %v883_v26  ;;  %v986_v35 = vadd.f32 %v2358_v6, %v915_v27 }
 0x11e   : > { %v1727_v36 = vpack.c.bf16 %v1016_v24, %v1015_v30  ;;  %v1807_v37 = vpack.c.bf16 %v1048_v25, %v1047_v31  ;;  %v953_v38 = vadd.f32 %v2358_v6, %v882_v32  ;;  %v985_v39 = vadd.f32 %v2358_v6, %v914_v33 }
 0x11f   : > { %v1018_v40 = vmax.f32 %v954_v34, 0.0  ;;  %v1050_v4 = vmax.f32 %v986_v35, 0.0 }
 0x120   : > { %1827 = vst [vmem:[%s2381_s29 + $0x70] sm:$0xff] %v1727_v36   ;;  %1843 = vst [vmem:[%s2381_s29 + $0xf0] sm:$0xff] %v1807_v37   ;;  %v1017_v41 = vmax.f32 %v953_v38, 0.0  ;;  %v1049_v42 = vmax.f32 %v985_v39, 0.0 }
 0x122   : > { %v1732_v6 = vpack.c.bf16 %v1018_v40, %v1017_v41  ;;  %v1812_v43 = vpack.c.bf16 %v1050_v4, %v1049_v42 }
 0x124   : > { %1828 = vst [vmem:[%s2381_s29 + $0x78] sm:$0xff] %v1732_v6   ;;  %1844 = vst [vmem:[%s2381_s29 + $0xf8] sm:$0xff] %v1812_v43  }
 0x125   : > { %2079 = shalt.err (!%p2076_p3)
}
 0x126   : > { %s2080_s13 = scalar_lea.hbm %s2528_s8, 4096  ;;  %s2084_s22 = scalar_lea.hbm %s2580_s4, 8192 }
 0x127   : > { %p2081_p4 = scmp.ne.s32.totalorder %s2528_s8, %s2080_s13  ;;  %p2085_p9 = scmp.lt.s32.totalorder %s2528_s8, %s2580_s4 }
 0x128   : > { %p2086_p10 = scmp.lt.s32.totalorder %s2084_s22, %s2080_s13 }
 0x129   : > { %p2082_p7 = pnand %p2081_p4, %p2194_p5 }
 0x12a   : > { %p2087_p11 = por %p2086_p10, %p2085_p9 }
 0x12b   : > { %p2083_p8 = pneg %p2082_p7 }
 0x12d   : > { %p2088_p12 = pnand %p2087_p11, %p2083_p8 }
 0x12f   : > { %2091 = shalt.err (!%p2088_p12)
}
 0x130   : > { %s2129_s28 = smov 64   ;;  %s2130_s29 = smov 4  }
 0x131   : > { %2025 = dma.vmem_to_hbm [thread:$0]  (%p2194_p5), %s2530_s5, 4096, %s2528_s8, %s2536_s19, %s2129_s28, %s2129_s28, %s2130_s29  }
 0x132 PF: > { %p2031_p13 = scmp.ge.s32.totalorder %s2126_s18, 2  ;;  %s1400_s30 = sand.u32 1, %s2114_s15  }
 0x133   : > { %s1401_s6 = scalar_lea.sflag [#allocation3], %s1400_s30 }
 0x134   : > { %p2028_p0 = pnand %p2031_p13, %p2198_p6 }
 0x136   : > { %p2029_p1 = pneg %p2028_p0 }
 0x138   : > { %2109 = dma.done.wait (%p2029_p1), %s1401_s6, 4096  }
 0x139   : > { %2111 = vsyncadd (%p2029_p1), %s1401_s6, 4294963200  ;;  %p14_p2 = scmp.ge.s32.totalorder %s2181_s21, 4   ;;  %s2583_s15 = smov %s2118_s16 }
 0x13a   : > { %s2584_s16 = smov %s2122_s17  ;;  %s2585_s17 = smov %s2192_s24 }
 0x13b   : > { %s2586_s18 = smov %s2181_s21  ;;  %16 = sbr.rel (!%p14_p2) target bundleno = 3 (0x3), region = 71 }
 0x140   :  { %1406 = vsyncpa [#allocation3], 1 }
 0x141   :  { %1408 = vsyncpa [#allocation3 + $0x1], 1 }

</bundles_post_ra>
